<compile_context>
chip_gen: v6e
topology: v6e:2x2x1
jax: 0.10.0
libtpu: 0.0.40
codegen_flags: <defaults>
</compile_context>

<pallas_src>
import functools

import jax
import jax.numpy as jnp
from jax import lax
from jax.experimental import pallas as pl
from jax.experimental.pallas import tpu as pltpu


def _dense_block_kernel(x_ref, w_ref, out_ref, *, H, W, KH, KW, pad):
    """One batch element per grid step; spatial dims flattened onto lanes.

    x_ref   : (1, Cin, H*W)        image, channels on sublanes, H*W on lanes
    w_ref   : (Cout, KH*KW*Cin)    conv weights as a single matmul matrix
    out_ref : (1, Cin+Cout, H*W)   concat([x, relu(conv(x))], channel)
    """
    Cin = x_ref.shape[1]
    Cout = w_ref.shape[0]
    HW = H * W

    x = x_ref[0]                                       # (Cin, HW) f32

    # Zero slack on both ends of the flattened spatial axis: a shift by
    # dh*W + dw moves out-of-range rows into the zero region, so only the
    # column (w) boundary needs explicit masking.
    padl = pad * (W + 1)
    zeros = jnp.zeros((Cin, padl), x.dtype)
    xbig = jnp.concatenate([zeros, x, zeros], axis=1)  # (Cin, HW + 2*padl)

    # Column index of every flattened position (for masking w+dw overflow).
    col = lax.broadcasted_iota(jnp.int32, (Cin, HW), 1) % W
    col_mask = {}
    for kw in range(KW):
        dw = kw - pad
        if dw != 0:
            col_mask[dw] = jnp.logical_and(col + dw >= 0, col + dw < W)

    # im2col: KH*KW lane-shifted copies stacked along sublanes -> one matmul.
    taps = []
    for kh in range(KH):
        dh = kh - pad
        for kw in range(KW):
            dw = kw - pad
            s = dh * W + dw
            t = xbig[:, padl + s: padl + s + HW]       # (Cin, HW) static lane shift
            if dw != 0:
                t = jnp.where(col_mask[dw], t, 0.0)
            taps.append(t)
    patch = jnp.concatenate(taps, axis=0)              # (KH*KW*Cin, HW)

    # conv == single MXU matmul with K = KH*KW*Cin (36), lane-dense output.
    ft = jnp.dot(w_ref[...], patch, preferred_element_type=jnp.float32)
    ft = jnp.maximum(ft, 0.0)                          # ReLU

    # Direct slice stores (no in-kernel concatenate temp).
    out_ref[0, 0:Cin, :] = x.astype(out_ref.dtype)
    out_ref[0, Cin:Cin + Cout, :] = ft.astype(out_ref.dtype)


@jax.jit
def dense_net_block(x_nchw, weight_oihw):
    """Pallas equivalent of Dense_net_block.forward.

    x_nchw      : (N, Cin, H, W)      float32
    weight_oihw : (Cout, Cin, KH, KW) float32 (PyTorch conv weight layout)
    returns     : (N, Cin+Cout, H, W) float32
    """
    N, Cin, H, W = x_nchw.shape
    Cout, Cin_w, KH, KW = weight_oihw.shape
    assert Cin_w == Cin
    pad = 1  # module hard-codes padding=1
    # padding=1 keeps H, W unchanged (so the concat is valid) only for 3x3.
    assert KH == KW and (KH - 1) // 2 == pad, "Dense_net_block requires 3x3 conv"

    HW = H * W
    # Free (bitcast) reshape: fold spatial dims onto the lane axis.
    x_flat = x_nchw.reshape(N, Cin, HW)
    # Tiny weight reshuffle (288 floats): OIHW -> (Cout, KH*KW*Cin), tap-major.
    w_mat = jnp.transpose(weight_oihw, (0, 2, 3, 1)).reshape(Cout, KH * KW * Cin)

    kernel = functools.partial(_dense_block_kernel, H=H, W=W, KH=KH, KW=KW, pad=pad)

    out_flat = pl.pallas_call(
        kernel,
        out_shape=jax.ShapeDtypeStruct((N, Cin + Cout, HW), x_nchw.dtype),
        grid_spec=pltpu.PrefetchScalarGridSpec(
            num_scalar_prefetch=0,
            grid=(N,),
            in_specs=[
                pl.BlockSpec((1, Cin, HW), lambda n: (n, 0, 0)),
                pl.BlockSpec((Cout, KH * KW * Cin), lambda n: (0, 0)),
            ],
            out_specs=pl.BlockSpec((1, Cin + Cout, HW), lambda n: (n, 0, 0)),
        ),
        compiler_params=pltpu.CompilerParams(
            dimension_semantics=("parallel",),  # shard batch across v7x's 2 TCs
        ),
    )(x_flat, w_mat)

    # Free (bitcast) reshape back to NCHW.
    return out_flat.reshape(N, Cin + Cout, H, W)


def _reference(x_nchw, weight_oihw):
    """Pure-JAX reference matching F.relu(F.conv2d(x, w, padding=1)); cat."""
    conv = lax.conv_general_dilated(
        x_nchw, weight_oihw,
        window_strides=(1, 1), padding=((1, 1), (1, 1)),
        dimension_numbers=("NCHW", "OIHW", "NCHW"),
    )
    ft = jnp.maximum(conv, 0.0)
    return jnp.concatenate([x_nchw, ft], axis=1)


if __name__ == "__main__":
    # Dense_net_block(outChannels=4, growth_rate=8, kernel_size=3)
    N, Cin, H, W = 2, 4, 16, 16
    Cout, K = 8, 3

    key = jax.random.PRNGKey(0)
    kx, kw = jax.random.split(key)
    x = jax.random.normal(kx, (N, Cin, H, W), dtype=jnp.float32)
    # Deterministic init (kaiming-uniform-like bound, as in nn.Conv2d default).
    fan_in = Cin * K * K
    bound = 1.0 / (fan_in ** 0.5)
    w = jax.random.uniform(kw, (Cout, Cin, K, K), dtype=jnp.float32,
                           minval=-bound, maxval=bound)

    out = dense_net_block(x, w)
    out = jax.block_until_ready(out)

    ref = _reference(x, w)
    assert out.shape == (N, Cin + Cout, H, W), out.shape
    assert jnp.allclose(out, ref, atol=1e-5, rtol=1e-5), "mismatch vs reference"
    print("KERNEL_OK")
</pallas_src>

<mosaic_0001>
module attributes {stable_mosaic.version = 11 : i64} {
  func.func @_dense_block_kernel(%arg0: i32, %arg1: memref<1x4x256xf32, #tpu.memory_space<vmem>>, %arg2: memref<8x36xf32, #tpu.memory_space<vmem>>, %arg3: memref<1x12x256xf32, #tpu.memory_space<vmem>>) attributes {dimension_semantics = [#tpu.dimension_semantics<parallel>], iteration_bounds = array<i64: 2>, scalar_prefetch = 0 : i64, scratch_operands = 0 : i64, tpu.core_type = #tpu.core_type<tc>, window_params = [{transform_indices = @transform_0, window_bounds = array<i64: 1, 4, 256>}, {pipeline_mode = #tpu.pipeline_mode<synchronous>, transform_indices = @transform_1, window_bounds = array<i64: 8, 36>}, {transform_indices = @transform_2, window_bounds = array<i64: 1, 12, 256>}]} {
    %c0 = arith.constant 0 : index
    %c0_0 = arith.constant 0 : index
    %c0_1 = arith.constant 0 : index
    %0 = vector.load %arg1[%c0, %c0_0, %c0_1] : memref<1x4x256xf32, #tpu.memory_space<vmem>>, vector<1x4x256xf32>
    %1 = vector.shape_cast %0 : vector<1x4x256xf32> to vector<4x256xf32>
    %cst = arith.constant 0.000000e+00 : f32
    %2 = vector.broadcast %cst : f32 to vector<4x17xf32>
    %3 = tpu.concatenate %2, %1, %2 in 1 : vector<4x17xf32>, vector<4x256xf32>, vector<4x17xf32> -> vector<4x290xf32>
    %4 = tpu.iota {dimensions = array<i32: 1>} : vector<4x256xi32>
    %c16_i32 = arith.constant 16 : i32
    %c0_i32 = arith.constant 0 : i32
    %5 = arith.cmpi eq, %c16_i32, %c0_i32 : i32
    %c1_i32 = arith.constant 1 : i32
    %6 = arith.select %5, %c1_i32, %c16_i32 : i32
    %7 = vector.broadcast %6 : i32 to vector<4x256xi32>
    %8 = arith.remsi %4, %7 : vector<4x256xi32>
    %c0_i32_2 = arith.constant 0 : i32
    %9 = vector.broadcast %c0_i32_2 : i32 to vector<4x256xi32>
    %10 = arith.cmpi ne, %8, %9 : vector<4x256xi32>
    %c0_i32_3 = arith.constant 0 : i32
    %11 = vector.broadcast %c0_i32_3 : i32 to vector<4x256xi32>
    %12 = arith.cmpi slt, %8, %11 : vector<4x256xi32>
    %c0_i32_4 = arith.constant 0 : i32
    %13 = arith.cmpi slt, %6, %c0_i32_4 : i32
    %14 = vector.broadcast %13 : i1 to vector<4x256xi1>
    %15 = vector.broadcast %14 : vector<4x256xi1> to vector<4x256xi1>
    %16 = arith.xori %12, %15 : vector<4x256xi1>
    %17 = arith.andi %16, %10 : vector<4x256xi1>
    %18 = vector.broadcast %6 : i32 to vector<4x256xi32>
    %19 = arith.addi %8, %18 : vector<4x256xi32>
    %20 = arith.select %17, %19, %8 : vector<4x256xi1>, vector<4x256xi32>
    %c-1_i32 = arith.constant -1 : i32
    %21 = vector.broadcast %c-1_i32 : i32 to vector<4x256xi32>
    %22 = arith.addi %20, %21 : vector<4x256xi32>
    %c0_i32_5 = arith.constant 0 : i32
    %23 = vector.broadcast %c0_i32_5 : i32 to vector<4x256xi32>
    %24 = arith.cmpi sge, %22, %23 : vector<4x256xi32>
    %c-1_i32_6 = arith.constant -1 : i32
    %25 = vector.broadcast %c-1_i32_6 : i32 to vector<4x256xi32>
    %26 = arith.addi %20, %25 : vector<4x256xi32>
    %c16_i32_7 = arith.constant 16 : i32
    %27 = vector.broadcast %c16_i32_7 : i32 to vector<4x256xi32>
    %28 = arith.cmpi slt, %26, %27 : vector<4x256xi32>
    %29 = arith.andi %24, %28 : vector<4x256xi1>
    %c1_i32_8 = arith.constant 1 : i32
    %30 = vector.broadcast %c1_i32_8 : i32 to vector<4x256xi32>
    %31 = arith.addi %20, %30 : vector<4x256xi32>
    %c0_i32_9 = arith.constant 0 : i32
    %32 = vector.broadcast %c0_i32_9 : i32 to vector<4x256xi32>
    %33 = arith.cmpi sge, %31, %32 : vector<4x256xi32>
    %c1_i32_10 = arith.constant 1 : i32
    %34 = vector.broadcast %c1_i32_10 : i32 to vector<4x256xi32>
    %35 = arith.addi %20, %34 : vector<4x256xi32>
    %c16_i32_11 = arith.constant 16 : i32
    %36 = vector.broadcast %c16_i32_11 : i32 to vector<4x256xi32>
    %37 = arith.cmpi slt, %35, %36 : vector<4x256xi32>
    %38 = arith.andi %33, %37 : vector<4x256xi1>
    %39 = vector.extract_strided_slice %3 {offsets = [0, 0], sizes = [4, 256], strides = [1, 1]} : vector<4x290xf32> to vector<4x256xf32>
    %cst_12 = arith.constant 0.000000e+00 : f32
    %40 = vector.broadcast %cst_12 : f32 to vector<4x256xf32>
    %41 = arith.select %29, %39, %40 : vector<4x256xi1>, vector<4x256xf32>
    %42 = vector.extract_strided_slice %3 {offsets = [0, 1], sizes = [4, 256], strides = [1, 1]} : vector<4x290xf32> to vector<4x256xf32>
    %43 = vector.extract_strided_slice %3 {offsets = [0, 2], sizes = [4, 256], strides = [1, 1]} : vector<4x290xf32> to vector<4x256xf32>
    %cst_13 = arith.constant 0.000000e+00 : f32
    %44 = vector.broadcast %cst_13 : f32 to vector<4x256xf32>
    %45 = arith.select %38, %43, %44 : vector<4x256xi1>, vector<4x256xf32>
    %46 = vector.extract_strided_slice %3 {offsets = [0, 16], sizes = [4, 256], strides = [1, 1]} : vector<4x290xf32> to vector<4x256xf32>
    %cst_14 = arith.constant 0.000000e+00 : f32
    %47 = vector.broadcast %cst_14 : f32 to vector<4x256xf32>
    %48 = arith.select %29, %46, %47 : vector<4x256xi1>, vector<4x256xf32>
    %49 = vector.extract_strided_slice %3 {offsets = [0, 17], sizes = [4, 256], strides = [1, 1]} : vector<4x290xf32> to vector<4x256xf32>
    %50 = vector.extract_strided_slice %3 {offsets = [0, 18], sizes = [4, 256], strides = [1, 1]} : vector<4x290xf32> to vector<4x256xf32>
    %cst_15 = arith.constant 0.000000e+00 : f32
    %51 = vector.broadcast %cst_15 : f32 to vector<4x256xf32>
    %52 = arith.select %38, %50, %51 : vector<4x256xi1>, vector<4x256xf32>
    %53 = vector.extract_strided_slice %3 {offsets = [0, 32], sizes = [4, 256], strides = [1, 1]} : vector<4x290xf32> to vector<4x256xf32>
    %cst_16 = arith.constant 0.000000e+00 : f32
    %54 = vector.broadcast %cst_16 : f32 to vector<4x256xf32>
    %55 = arith.select %29, %53, %54 : vector<4x256xi1>, vector<4x256xf32>
    %56 = vector.extract_strided_slice %3 {offsets = [0, 33], sizes = [4, 256], strides = [1, 1]} : vector<4x290xf32> to vector<4x256xf32>
    %57 = vector.extract_strided_slice %3 {offsets = [0, 34], sizes = [4, 256], strides = [1, 1]} : vector<4x290xf32> to vector<4x256xf32>
    %cst_17 = arith.constant 0.000000e+00 : f32
    %58 = vector.broadcast %cst_17 : f32 to vector<4x256xf32>
    %59 = arith.select %38, %57, %58 : vector<4x256xi1>, vector<4x256xf32>
    %60 = tpu.concatenate %41, %42, %45, %48, %49, %52, %55, %56, %59 in 0 : vector<4x256xf32>, vector<4x256xf32>, vector<4x256xf32>, vector<4x256xf32>, vector<4x256xf32>, vector<4x256xf32>, vector<4x256xf32>, vector<4x256xf32>, vector<4x256xf32> -> vector<36x256xf32>
    %c0_18 = arith.constant 0 : index
    %c0_19 = arith.constant 0 : index
    %61 = vector.load %arg2[%c0_18, %c0_19] : memref<8x36xf32, #tpu.memory_space<vmem>>, vector<8x36xf32>
    %cst_20 = arith.constant dense<0.000000e+00> : vector<8x256xf32>
    %62 = tpu.matmul %61, %60, %cst_20 {dimension_numbers = #tpu.dot_dimension_numbers<[1], [0], [0], [1], [0, 0, 1, 1], [], []>} : vector<8x36xf32>, vector<36x256xf32>, vector<8x256xf32> -> vector<8x256xf32>
    %cst_21 = arith.constant 0.000000e+00 : f32
    %63 = vector.broadcast %cst_21 : f32 to vector<8x256xf32>
    %64 = arith.maximumf %62, %63 : vector<8x256xf32>
    %c0_22 = arith.constant 0 : index
    %c0_23 = arith.constant 0 : index
    %c0_24 = arith.constant 0 : index
    %65 = vector.load %arg3[%c0_22, %c0_23, %c0_24] : memref<1x12x256xf32, #tpu.memory_space<vmem>>, vector<1x4x256xf32>
    %66 = vector.shape_cast %65 : vector<1x4x256xf32> to vector<4x256xf32>
    %67 = vector.shape_cast %1 : vector<4x256xf32> to vector<1x4x256xf32>
    tpu.vector_store %arg3[%c0_22, %c0_23, %c0_24], %67 {strides = array<i32>} : memref<1x12x256xf32, #tpu.memory_space<vmem>>, vector<1x4x256xf32>,
    %c0_25 = arith.constant 0 : index
    %c4 = arith.constant 4 : index
    %c0_26 = arith.constant 0 : index
    %68 = vector.load %arg3[%c0_25, %c4, %c0_26] : memref<1x12x256xf32, #tpu.memory_space<vmem>>, vector<1x8x256xf32>
    %69 = vector.shape_cast %68 : vector<1x8x256xf32> to vector<8x256xf32>
    %70 = vector.shape_cast %64 : vector<8x256xf32> to vector<1x8x256xf32>
    tpu.vector_store %arg3[%c0_25, %c4, %c0_26], %70 {strides = array<i32>} : memref<1x12x256xf32, #tpu.memory_space<vmem>>, vector<1x8x256xf32>,
    return
  }
  func.func @transform_0(%arg0: i32) -> (i32, i32, i32) {
    %c0_i32 = arith.constant 0 : i32
    %c0_i32_0 = arith.constant 0 : i32
    %c0_i32_1 = arith.constant 0 : i32
    return %arg0, %c0_i32, %c0_i32_0 : i32, i32, i32
  }
  func.func @transform_1(%arg0: i32) -> (i32, i32) {
    %c0_i32 = arith.constant 0 : i32
    %c0_i32_0 = arith.constant 0 : i32
    %c0_i32_1 = arith.constant 0 : i32
    return %c0_i32, %c0_i32_0 : i32, i32
  }
  func.func @transform_2(%arg0: i32) -> (i32, i32, i32) {
    %c0_i32 = arith.constant 0 : i32
    %c0_i32_0 = arith.constant 0 : i32
    %c0_i32_1 = arith.constant 0 : i32
    return %arg0, %c0_i32, %c0_i32_0 : i32, i32, i32
  }
}

</mosaic_0001>

<bundles_post_ra>
// kernel: dense_net_block.1
= control target key start
LH: loop header
LB: loop body
LE: loop exit
PB: predicated region body
PF: predicated region fallthrough
CT: control target
= control target key end

     0   :  { %s547_s9 = smov 0   ;;  %s639_s0 = inlined_call_operand.vmem [shape: f32[2,4,256], index: 0, kind: input, shape index: {}]   ;;  %s640_s1 = inlined_call_operand.vmem [shape: f32[8,36], index: 1, kind: input, shape index: {}]   ;;  %s641_s2 = inlined_call_operand.vmem [shape: f32[2,12,256], index: 2, kind: output, shape index: {}]  }
   0x1 LB: > { %s479_s10 = sadd.s32 4294967295, %s520_s9   ;;  %p483_p0 = scmp.ge.s32.totalorder %s520_s9, 1  ;;  %s520_s9 = sphi %s547_s9, %s12_s9  }
   0x2   : > { %p112_p1 = scmp.lt.s32.totalorder %s520_s9, 3 }
   0x4   : > { %p113_p2 = pnand %p483_p0, %p112_p1 }
   0x5   : > { %p134_p3 = scmp.lt.s32.totalorder (!%p113_p2), %s479_s10, 1  ;;  %s522_s19 = smov (!%p113_p2), 17  }
   0x6   : > { %116 = sbr.rel (%p113_p2) target bundleno = 497 (0x1f1), region = 28  ;;  %s523_s20 = smov (!%p113_p2), 110  }
   0x7   : > { %s524_s21 = smov (!%p113_p2), 94   ;;  %s525_s22 = smov (!%p113_p2), 111  }
   0x8   : > { %s526_s23 = smov (!%p113_p2), 96   ;;  %s527_s24 = smov (!%p113_p2), 112  }
   0x9   : > { %s528_s25 = smov (!%p113_p2), 126   ;;  %s529_s26 = smov (!%p113_p2), 95  }
   0xa   : > { %s531_s27 = smov (!%p113_p2), 127  }
   0xb   : > { %s643_s10 = smov (!%p134_p3, %s479_s10), 1  ;;  %vm151_vm0 = vcmask 138240   ;;  %v530_v9 = vmov 0.0   ;;  %v158_v11 = vlaneseq  ;;  %vm263_vm1 = vcmask 769024  }
   0xc   : > { %s493_s11 = sshll.u32 %s643_s10, 3  ;;  %s494_s12 = sshll.u32 %s643_s10, 5  ;;  %402 = vmatprep.mubr.f32.mxu0 %v530_v9  ;;  %vm318_vm4 = vcmask 1043456   ;;  %vm237_vm5 = vcmask 900096   ;;  %vm250_vm6 = vcmask 785408   ;;  %vm224_vm7 = vcmask 916480  }
   0xd   : > { %s138_s15 = scalar_lea.vmem %s639_s0, %s493_s11  ;;  %s561_s18 = scalar_lea.vmem %s641_s2, %s494_s12  ;;  %v159_v12 = vand.u32 127, %v158_v11  ;;  %vm211_vm8 = vcmask 1031168   ;;  %vm296_vm11 = vcmask 908288   ;;  %vm313_vm12 = vcmask 777216  }
   0xe   : > { %v144_v0 = vld [vmem:[%s138_s15] sm:$0xff]  ;;  %vm279_vm13 = vcmask 1039360   ;;  %vm328_vm14 = vcmask 293888  }
   0xf   : > { %147 = vrot.lane.b32.xlu0 %v144_v0, %s522_s19  ;;  %412 = vst [vmem:[%s561_s18] sm:$0xf] %v144_v0  ;;  %v146_v1 = vcombine.high %v144_v0, %v144_v0  ;;  %v160_v15 = vadd.s32 128, %v159_v12  ;;  %v165_v19 = vand.u32 15, %v159_v12 }
  0x11   : > { %413 = vst [vmem:[%s561_s18 + $0x8] sm:$0xf] %v146_v1  ;;  %v172_v18 = vand.u32 15, %v160_v15  ;;  %v590_v23 = vadd.s32 1, %v165_v19  ;;  %v185_v41 = vadd.s32 4294967295, %v165_v19 }
  0x13   : > { %149 = vrot.lane.b32.xlu0 %v146_v1, %s522_s19  ;;  %v588_v20 = vadd.s32 1, %v172_v18  ;;  %vm197_vm3 = vcmp.lt.s32.totalorder %v590_v23, 16  ;;  %v186_v42 = vadd.s32 4294967295, %v172_v18  ;;  %vm187_vm9 = vcmp.ge.s32.totalorder %v185_v41, 0 }
  0x15   : > { %vm198_vm2 = vcmp.lt.s32.totalorder %v588_v20, 16  ;;  %vm188_vm10 = vcmp.ge.s32.totalorder %v186_v42, 0 }
  0x81   : > { %v148_v2 = vpop.permute.xlu0 %147 }
  0x82   : > { %v566_v3 = vsel %vm151_vm0, 0.0, %v148_v2 }
  0x83   : > { %231 = vrot.lane.b32.xlu1 %v566_v3, %s523_s20  ;;  %257 = vrot.lane.b32.xlu0 %v566_v3, %s524_s21  ;;  %v270_v7 = vrot.slane %v566_v3, 4  ;;  %v201_v20 = vsel %vm187_vm9, %v566_v3, 0.0 }
  0x85   : > { %v150_v4 = vpop.permute.xlu0 %149 }
  0x86   : > { %v573_v5 = vsel %vm151_vm0, %v148_v2, %v150_v4  ;;  %v157_v6 = vsel %vm151_vm0, %v150_v4, 0.0 }
  0x87   : > { %290 = vrot.lane.b32.xlu1 %v566_v3, %s525_s22  ;;  %244 = vrot.lane.b32.xlu0 %v566_v3, %s526_s23  ;;  %v272_v8 = vrot.slane %v157_v6, 4  ;;  %v271_v10 = vrot.slane %v573_v5, 4 }
  0x8b   : > { %218 = vrot.lane.b32.xlu0 %v566_v3, %s527_s24  ;;  %259 = vrot.lane.b32.xlu1 %v573_v5, %s524_s21 }
  0x8f   : > { %233 = vrot.lane.b32.xlu0 %v573_v5, %s523_s20  ;;  %261 = vrot.lane.b32.xlu1 %v157_v6, %s524_s21 }
  0x93   : > { %246 = vrot.lane.b32.xlu0 %v573_v5, %s526_s23  ;;  %235 = vrot.lane.b32.xlu1 %v157_v6, %s523_s20 }
  0x97   : > { %222 = vrot.lane.b32.xlu0 %v157_v6, %s527_s24  ;;  %248 = vrot.lane.b32.xlu1 %v157_v6, %s526_s23 }
  0x9b   : > { %294 = vrot.lane.b32.xlu0 %v157_v6, %s525_s22  ;;  %220 = vrot.lane.b32.xlu1 %v573_v5, %s527_s24 }
  0x9f   : > { %209 = vrot.lane.b32.xlu0 %v157_v6, %s528_s25  ;;  %307 = vrot.lane.b32.xlu1 %v270_v7, %s529_s26 }
  0xa3   : > { %311 = vrot.lane.b32.xlu0 %v272_v8, %s529_s26  ;;  %292 = vrot.lane.b32.xlu1 %v573_v5, %s525_s22 }
  0xa7   : > { %205 = vrot.lane.b32.xlu0 %v566_v3, %s528_s25  ;;  %207 = vrot.lane.b32.xlu1 %v573_v5, %s528_s25 }
  0xab   : > { %277 = vrot.lane.b32.xlu0 %v272_v8, %s531_s27  ;;  %309 = vrot.lane.b32.xlu1 %v271_v10, %s529_s26 }
  0xaf   : > { %275 = vrot.lane.b32.xlu1 %v271_v10, %s531_s27 }
  0xb3   : > { %273 = vrot.lane.b32.xlu1 %v270_v7, %s531_s27 }
  0xf5   : > { %v232_v13 = vpop.permute.xlu1 %231  ;;  %v258_v14 = vpop.permute.xlu0 %257 }
  0xf9   : > { %v586_v16 = vpop.permute.xlu1 %290  ;;  %v245_v17 = vpop.permute.xlu0 %244 }
  0xfd   : > { %v260_v21 = vpop.permute.xlu1 %259  ;;  %v219_v22 = vpop.permute.xlu0 %218 }
  0xfe   : > { %v264_v24 = vsel %vm263_vm1, %v258_v14, %v260_v21 }
  0xff   : > { %v268_v29 = vsel %vm197_vm3, %v264_v24, 0.0 }
 0x101   : > { %v262_v25 = vpop.permute.xlu1 %261  ;;  %v234_v26 = vpop.permute.xlu0 %233 }
 0x102   : > { %v265_v27 = vsel %vm263_vm1, %v260_v21, %v262_v25  ;;  %v238_v43 = vsel %vm237_vm5, %v232_v13, %v234_v26  ;;  %v327_v21 = vld [vmem:[%s640_s1] sm:$0xff] }
 0x103   : > { %v269_v28 = vsel %vm198_vm2, %v265_v27, 0.0  ;;  %v242_v50 = vsel %vm197_vm3, %v238_v43, 0.0 }
 0x104   : > { %488 = vmatprep.subr.msk.mxu0 %vm318_vm4, %v269_v28  ;;  %v303_v2 = vrot.slane %v242_v50, 4 }
 0x105   : > { %v236_v30 = vpop.permute.xlu1 %235  ;;  %489 = vmatpush1.msk.msra.mxu0 %vm318_vm4, %v268_v29  ;;  %v247_v31 = vpop.permute.xlu0 %246 }
 0x106   : > { %v239_v40 = vsel %vm237_vm5, %v234_v26, %v236_v30  ;;  %v251_v44 = vsel %vm250_vm6, %v245_v17, %v247_v31 }
 0x107   : > { %v243_v46 = vsel %vm198_vm2, %v239_v40, 0.0  ;;  %v255_v51 = vsel %vm187_vm9, %v251_v44, 0.0 }
 0x108   : > { %v304_v53 = vrot.slane %v243_v46, 4 }
 0x109   : > { %v249_v32 = vpop.permute.xlu1 %248  ;;  %v223_v33 = vpop.permute.xlu0 %222 }
 0x10a   : > { %v252_v47 = vsel %vm250_vm6, %v247_v31, %v249_v32 }
 0x10b   : > { %v256_v54 = vsel %vm188_vm10, %v252_v47, 0.0 }
 0x10d   : > { %v221_v34 = vpop.permute.xlu1 %220  ;;  %v295_v35 = vpop.permute.xlu0 %294 }
 0x10e   : > { %v226_v48 = vsel %vm224_vm7, %v221_v34, %v223_v33  ;;  %v225_v52 = vsel %vm224_vm7, %v219_v22, %v221_v34 }
 0x10f   : > { %v230_v55 = vsel %vm188_vm10, %v226_v48, 0.0  ;;  %v229_v62 = vsel %vm187_vm9, %v225_v52, 0.0 }
 0x110   : > { %v287_v6 = vrot.slane %v230_v55, 4  ;;  %v286_v11 = vrot.slane %v229_v62, 4 }
 0x111   : > { %v308_v36 = vpop.permute.xlu1 %307  ;;  %v210_v37 = vpop.permute.xlu0 %209 }
 0x115   : > { %v293_v38 = vpop.permute.xlu1 %292  ;;  %v312_v39 = vpop.permute.xlu0 %311 }
 0x116   : > { %v298_v58 = vsel %vm296_vm11, %v293_v38, %v295_v35  ;;  %v297_v63 = vsel %vm296_vm11, %v586_v16, %v293_v38  ;;  %v202_v16 = vsel %vm188_vm10, %v573_v5, 0.0 }
 0x117   : > { %v324_v10 = vsel %vm318_vm4, %v298_v58, %v304_v53  ;;  %v323_v13 = vsel %vm318_vm4, %v297_v63, %v303_v2 }
 0x119   : > { %v208_v45 = vpop.permute.xlu1 %207  ;;  %v206_v49 = vpop.permute.xlu0 %205 }
 0x11a   : > { %v213_v56 = vsel %vm211_vm8, %v208_v45, %v210_v37  ;;  %v212_v59 = vsel %vm211_vm8, %v206_v49, %v208_v45 }
 0x11b   : > { %v217_v4 = vsel %vm198_vm2, %v213_v56, 0.0  ;;  %v216_v7 = vsel %vm197_vm3, %v212_v59, 0.0 }
 0x11c   : > { %v322_v14 = vsel %vm318_vm4, %v217_v4, %v287_v6  ;;  %v321_v15 = vsel %vm318_vm4, %v216_v7, %v286_v11 }
 0x11d   : > { %v310_v57 = vpop.permute.xlu1 %309  ;;  %v278_v8 = vpop.permute.xlu0 %277 }
 0x11e   : > { %v314_v60 = vsel %vm313_vm12, %v308_v36, %v310_v57  ;;  %v315_v61 = vsel %vm313_vm12, %v310_v57, %v312_v39 }
 0x11f   : > { %v326_v0 = vsel %vm318_vm4, %v256_v54, %v315_v61  ;;  %v325_v1 = vsel %vm318_vm4, %v255_v51, %v314_v60 }
 0x120   : > { %362 = vmatprep.subr.mxu0 %v326_v0 }
 0x121   : > { %v276_v9 = vpop.permute.xlu1 %275  ;;  %363 = vmatpush1.msra.mxu0 %v325_v1 }
 0x122   : > { %v281_v12 = vsel %vm279_vm13, %v276_v9, %v278_v8  ;;  %364 = vmatprep.subr.mxu0 %v324_v10 }
 0x123   : > { %365 = vmatpush1.msra.mxu0 %v323_v13  ;;  %v320_v18 = vsel %vm318_vm4, %v202_v16, %v281_v12 }
 0x124   : > { %366 = vmatprep.subr.mxu0 %v322_v14 }
 0x125   : > { %v274_v17 = vpop.permute.xlu1 %273  ;;  %367 = vmatpush1.msra.mxu0 %v321_v15 }
 0x126   : > { %v280_v19 = vsel %vm279_vm13, %v274_v17, %v276_v9  ;;  %368 = vmatprep.subr.mxu0 %v320_v18 }
 0x127   : > { %v319_v22 = vsel %vm318_vm4, %v201_v20, %v280_v19 }
 0x128   : > { %369 = vmatpush1.msra.mxu0 %v319_v22 }
 0x129   : > { %490 = vmatmul.mubr.msk.f32.vlgmr.msra.gmra.mxu0 %vm328_vm14, %v327_v21 }
 0x1e9   : > { %v404_v5 = vpop.f32.mrf.mxu0 }
 0x1ea   : > { %v409_v23 = vmax.f32 %v404_v5, 0.0 }
 0x1eb   : > { %v406_v24 = vpop.f32.mrf.mxu0 }
 0x1ec   : > { %v416_v25 = vrot.slane %v409_v23, 4  ;;  %v410_v26 = vmax.f32 %v406_v24, 0.0 }
 0x1ee   : > { %420 = vst [vmem:[%s561_s18 + $0x10] ss:$-12 sps:$4 sm:$0xff] %v416_v25   ;;  %v417_v27 = vrot.slane %v410_v26, 4 }
 0x1f0   : > { %421 = vst [vmem:[%s561_s18 + $0x18] ss:$-12 sps:$4 sm:$0xff] %v417_v27  }
 0x1f1 PF: > { %s12_s9 = sadd.s32 1, %s520_s9  }
 0x1f2   : > { %p9_p4 = scmp.ge.s32.totalorder %s12_s9, 4  }
 0x1f4   :  { %11 = sbr.rel (!%p9_p4) target bundleno = 1 (0x1), region = 58 }

</bundles_post_ra>
